<compile_context>
chip_gen: v7x
topology: tpu7x:2x2x1
jax: 0.10.0
libtpu: 0.0.40
codegen_flags: <defaults>
</compile_context>

<pallas_src>
import functools

import jax
import jax.numpy as jnp
from jax import lax
from jax.experimental import pallas as pl
from jax.experimental.pallas import tpu as pltpu


def _selective_softmax_kernel(x_ref, o_ref, *, lo, hi, slab_lo, slab_hi, c):
    # x_ref / o_ref: (1, C, T) in VMEM.  Softmax over the channel (sublane)
    # axis restricted to [lo, hi); all other channels pass through untouched.
    x = x_ref[...]                                  # (1, C, T)
    xs = x[:, slab_lo:slab_hi, :]                   # sublane-aligned static slice
    xf = xs.astype(jnp.float32)

    # (1, slab_c, 1) channel mask -- broadcasts over lanes inside the selects.
    ch = lax.broadcasted_iota(jnp.int32, (1, slab_hi - slab_lo, 1), 1) + slab_lo
    mask = (ch >= lo) & (ch < hi)

    neg_inf = jnp.float32(-jnp.inf)
    xm = jnp.where(mask, xf, neg_inf)               # reused for max AND exp
    m = jnp.max(xm, axis=1, keepdims=True)          # (1, 1, T)
    e = jnp.exp(xm - m)                             # exp(-inf) = 0 outside [lo,hi)
    s = jnp.sum(e, axis=1, keepdims=True)           # (1, 1, T)

    # EUP reciprocal + one Newton-Raphson step (cheap; restores f32 accuracy).
    r = pl.reciprocal(s, approx=True)
    r = r * (2.0 - s * r)
    soft = (e * r).astype(x.dtype)

    slab_out = jnp.where(mask, soft, xs)            # pass-through inside slab

    # Single unmasked, lane-dense, full-width store (sublane-aligned assembly).
    if slab_lo == 0 and slab_hi == c:
        o_ref[...] = slab_out
    else:
        parts = []
        if slab_lo > 0:
            parts.append(x[:, :slab_lo, :])
        parts.append(slab_out)
        if slab_hi < c:
            parts.append(x[:, slab_hi:, :])
        o_ref[...] = jnp.concatenate(parts, axis=1)


def _vmem_plan():
    """Returns (is_v7, block_byte_budget, vmem_limit_bytes) per chip generation."""
    try:
        kind = jax.devices()[0].device_kind.lower()
    except Exception:
        kind = ""
    is_v7 = "7" in kind
    if (not is_v7) and (("v5" in kind) or ("v6" in kind)):
        # v5e / v5p / v6e: 128 MiB physical VMEM -> go big on blocks.
        return False, 64 << 20, 100 << 20
    # v7x (64 MiB per TC) or unknown chip: stay tight, leave headroom.
    return is_v7, 24 << 20, 40 << 20


def _pick_tile_hw(hw, per_col_bytes, block_budget):
    fit = int(block_budget // max(per_col_bytes, 1))
    fit = (fit // 128) * 128
    if fit < 128:
        fit = 128
    if hw <= fit:
        return hw                       # full dim: (8,128) rule satisfied
    # Prefer a 128-multiple tile that divides hw evenly (no ragged epilogue),
    # but never drop below half the VMEM-fitting tile size for it.
    floor = max(128, fit // 2)
    t = fit
    while t >= floor:
        if hw % t == 0:
            return t
        t -= 128
    return fit                          # ragged last block; Pallas masks it


def selective_softmax(x_nchw, softmax_range):
    """x_nchw: (N, C, H, W). Softmax over channels restricted to [lo, hi)."""
    n, c, h, w = x_nchw.shape
    lo, hi = softmax_range
    lo = max(0, int(lo))
    hi = min(c, int(hi))
    if hi <= lo:
        # Empty selection -> identity (matches x.clone() with an empty slice).
        return x_nchw

    itemsize = jnp.dtype(x_nchw.dtype).itemsize
    sub = {1: 32, 2: 16, 4: 8}.get(itemsize, 8)      # sublane multiple per dtype
    slab_lo = (lo // sub) * sub
    slab_hi = min(c, -(-hi // sub) * sub)
    slab_c = slab_hi - slab_lo

    hw = h * w
    x3d = x_nchw.reshape(n, c, hw)                   # free reshape; stays NCHW

    is_v7, block_budget, vmem_limit = _vmem_plan()
    # Per-lane-column bytes: 4 double-buffered block copies (in+out) + the
    # f32 slab temporaries (xm, e) + slab-sized soft/slab_out + concat output.
    per_col = 5 * c * itemsize + slab_c * (12 + 2 * itemsize)
    tile_hw = _pick_tile_hw(hw, per_col, block_budget)
    grid = (n, pl.cdiv(hw, tile_hw))

    kernel = functools.partial(_selective_softmax_kernel, lo=lo, hi=hi,
                               slab_lo=slab_lo, slab_hi=slab_hi, c=c)

    def build(semantics):
        return pl.pallas_call(
            kernel,
            out_shape=jax.ShapeDtypeStruct((n, c, hw), x_nchw.dtype),
            grid_spec=pltpu.PrefetchScalarGridSpec(
                num_scalar_prefetch=0,
                grid=grid,
                in_specs=[pl.BlockSpec((1, c, tile_hw),
                                       lambda nb, sb: (nb, 0, sb))],
                out_specs=pl.BlockSpec((1, c, tile_hw),
                                       lambda nb, sb: (nb, 0, sb)),
            ),
            compiler_params=pltpu.CompilerParams(
                dimension_semantics=semantics,
                vmem_limit_bytes=int(vmem_limit),
            ),
        )

    base = (pltpu.PARALLEL, pltpu.PARALLEL)
    sems = base
    if is_v7:
        # Shard the longer even-sized grid axis across both v7x TensorCores.
        if grid[1] >= grid[0] and grid[1] % 2 == 0:
            sems = (pltpu.PARALLEL, pltpu.CORE_PARALLEL)
        elif grid[0] % 2 == 0:
            sems = (pltpu.CORE_PARALLEL, pltpu.PARALLEL)

    if sems == base:
        out3d = build(base)(x3d)
    else:
        try:
            out3d = jax.block_until_ready(build(sems)(x3d))
        except Exception:
            # Safe fallback if CORE_PARALLEL is rejected on this chip/shape.
            out3d = build(base)(x3d)

    return out3d.reshape(n, c, h, w)


def _reference(x_nchw, softmax_range):
    lo, hi = softmax_range
    soft = jax.nn.softmax(x_nchw[:, lo:hi], axis=1)
    return x_nchw.at[:, lo:hi].set(soft)


if __name__ == "__main__":
    key = jax.random.PRNGKey(0)
    # Small NCHW input consistent with the module's forward (softmax over dim 1).
    # C=32 with an unaligned range exercises both the slab math and the
    # pass-through concat path on both sides of the slab.
    N, C, H, W = 2, 32, 16, 16
    softmax_range = (9, 21)

    x = jax.random.normal(key, (N, C, H, W), dtype=jnp.float32)

    out = jax.block_until_ready(selective_softmax(x, softmax_range))
    ref = _reference(x, softmax_range)

    assert out.shape == x.shape and out.dtype == x.dtype
    assert jnp.allclose(out, ref, atol=1e-4, rtol=1e-4), float(
        jnp.max(jnp.abs(out - ref)))

    print("KERNEL_OK")
</pallas_src>

<mosaic_0001>
module attributes {stable_mosaic.version = 11 : i64} {
  func.func @_selective_softmax_kernel(%arg0: i32, %arg1: i32, %arg2: memref<1x32x256xf32, #tpu.memory_space<vmem>>, %arg3: memref<1x32x256xf32, #tpu.memory_space<vmem>>) attributes {dimension_semantics = [#tpu.dimension_semantics<parallel>, #tpu.dimension_semantics<parallel>], iteration_bounds = array<i64: 2, 1>, scalar_prefetch = 0 : i64, scratch_operands = 0 : i64, tpu.core_type = #tpu.core_type<tc>, window_params = [{transform_indices = @transform_0, window_bounds = array<i64: 1, 32, 256>}, {transform_indices = @transform_1, window_bounds = array<i64: 1, 32, 256>}]} {
    %c0 = arith.constant 0 : index
    %c0_0 = arith.constant 0 : index
    %c0_1 = arith.constant 0 : index
    %0 = vector.load %arg2[%c0, %c0_0, %c0_1] : memref<1x32x256xf32, #tpu.memory_space<vmem>>, vector<1x32x256xf32>
    %1 = vector.extract_strided_slice %0 {offsets = [0, 8, 0], sizes = [1, 16, 256], strides = [1, 1, 1]} : vector<1x32x256xf32> to vector<1x16x256xf32>
    %2 = tpu.iota {dimensions = array<i32: 1>} : vector<1x16x1xi32>
    %c8_i32 = arith.constant 8 : i32
    %3 = vector.broadcast %c8_i32 : i32 to vector<1x16x1xi32>
    %4 = arith.addi %2, %3 : vector<1x16x1xi32>
    %c9_i32 = arith.constant 9 : i32
    %5 = vector.broadcast %c9_i32 : i32 to vector<1x16x1xi32>
    %6 = arith.cmpi sge, %4, %5 : vector<1x16x1xi32>
    %c21_i32 = arith.constant 21 : i32
    %7 = vector.broadcast %c21_i32 : i32 to vector<1x16x1xi32>
    %8 = arith.cmpi slt, %4, %7 : vector<1x16x1xi32>
    %9 = arith.andi %6, %8 : vector<1x16x1xi1>
    %cst = arith.constant 0xFF800000 : f32
    %10 = vector.shape_cast %9 : vector<1x16x1xi1> to vector<1x16x1xi1>
    %11 = vector.broadcast %10 : vector<1x16x1xi1> to vector<1x16x256xi1>
    %12 = vector.broadcast %cst : f32 to vector<1x16x256xf32>
    %13 = arith.select %11, %1, %12 : vector<1x16x256xi1>, vector<1x16x256xf32>
    %cst_2 = arith.constant dense<0xFF800000> : vector<1x256xf32>
    %14 = vector.multi_reduction <maximumf>, %13, %cst_2 [1] : vector<1x16x256xf32> to vector<1x256xf32>
    %15 = vector.shape_cast %14 : vector<1x256xf32> to vector<1x1x256xf32>
    %16 = vector.broadcast %15 : vector<1x1x256xf32> to vector<1x16x256xf32>
    %17 = arith.subf %13, %16 : vector<1x16x256xf32>
    %18 = math.exp %17 : vector<1x16x256xf32>
    %cst_3 = arith.constant dense<0.000000e+00> : vector<1x256xf32>
    %19 = vector.multi_reduction <add>, %18, %cst_3 [1] : vector<1x16x256xf32> to vector<1x256xf32>
    %20 = vector.shape_cast %19 : vector<1x256xf32> to vector<1x1x256xf32>
    %21 = tpu.reciprocal %20 {approx = true} : vector<1x1x256xf32> -> vector<1x1x256xf32>
    %22 = arith.mulf %20, %21 : vector<1x1x256xf32>
    %cst_4 = arith.constant 2.000000e+00 : f32
    %23 = vector.broadcast %cst_4 : f32 to vector<1x1x256xf32>
    %24 = arith.subf %23, %22 : vector<1x1x256xf32>
    %25 = arith.mulf %21, %24 : vector<1x1x256xf32>
    %26 = vector.broadcast %25 : vector<1x1x256xf32> to vector<1x16x256xf32>
    %27 = arith.mulf %18, %26 : vector<1x16x256xf32>
    %28 = vector.shape_cast %9 : vector<1x16x1xi1> to vector<1x16x1xi1>
    %29 = vector.broadcast %28 : vector<1x16x1xi1> to vector<1x16x256xi1>
    %30 = arith.select %29, %27, %1 : vector<1x16x256xi1>, vector<1x16x256xf32>
    %31 = vector.extract_strided_slice %0 {offsets = [0, 0, 0], sizes = [1, 8, 256], strides = [1, 1, 1]} : vector<1x32x256xf32> to vector<1x8x256xf32>
    %32 = vector.extract_strided_slice %0 {offsets = [0, 24, 0], sizes = [1, 8, 256], strides = [1, 1, 1]} : vector<1x32x256xf32> to vector<1x8x256xf32>
    %33 = tpu.concatenate %31, %30, %32 in 1 : vector<1x8x256xf32>, vector<1x16x256xf32>, vector<1x8x256xf32> -> vector<1x32x256xf32>
    %c0_5 = arith.constant 0 : index
    %c0_6 = arith.constant 0 : index
    %c0_7 = arith.constant 0 : index
    %34 = vector.load %arg3[%c0_5, %c0_6, %c0_7] : memref<1x32x256xf32, #tpu.memory_space<vmem>>, vector<1x32x256xf32>
    tpu.vector_store %arg3[%c0_5, %c0_6, %c0_7], %33 {strides = array<i32>} : memref<1x32x256xf32, #tpu.memory_space<vmem>>, vector<1x32x256xf32>,
    return
  }
  func.func @transform_0(%arg0: i32, %arg1: i32) -> (i32, i32, i32) {
    %c0_i32 = arith.constant 0 : i32
    %c0_i32_0 = arith.constant 0 : i32
    return %arg0, %c0_i32, %arg1 : i32, i32, i32
  }
  func.func @transform_1(%arg0: i32, %arg1: i32) -> (i32, i32, i32) {
    %c0_i32 = arith.constant 0 : i32
    %c0_i32_0 = arith.constant 0 : i32
    return %arg0, %c0_i32, %arg1 : i32, i32, i32
  }
}

</mosaic_0001>

<bundles_post_ra>
// kernel: tpu_custom_call.1
= control target key start
LH: loop header
LB: loop body
LE: loop exit
PB: predicated region body
PF: predicated region fallthrough
CT: control target
= control target key end

     0   :  { %6 = vsyncpa [#allocation3], 0  ;;  %s798_s0 = inlined_call_operand.hbm [shape: f32[2,32,256], index: 0, kind: input, shape index: {}]   ;;  %s799_s1 = inlined_call_operand.hbm [shape: f32[2,32,256], index: 1, kind: output, shape index: {}]  }
   0x1   :  { %8 = vsyncpa [#allocation3 + $0x1], 0 }
   0x2   :  { %9 = vsyncpa [#allocation4], 0 }
   0x3   :  { %11 = vsyncpa [#allocation4 + $0x1], 0  ;;  %s573_s6 = smov 0   ;;  %s575_s7 = smov 0  }
   0x4   :  { %s577_s8 = smov 0   ;;  %s579_s9 = smov 0  }
   0x5   :  { %s581_s10 = smov 0   ;;  %s583_s11 = smov 0  }
   0x6 LB: > { %s348_s12 = sadd.s32 4294967295, %s555_s11   ;;  %s349_s13 = sadd.s32 4294967294, %s555_s11   ;;  %s555_s11 = sphi %s583_s11, %s17_s11   ;;  %s551_s10 = sphi %s581_s10, %s814_s10   ;;  %s547_s9 = sphi %s579_s9, %s813_s9   ;;  %s543_s8 = sphi %s577_s8, %s812_s8   ;;  %s539_s7 = sphi %s575_s7, %s811_s7   ;;  %s535_s6 = sphi %s573_s6, %s810_s6  }
   0x7   : > { %s29_s14 = sadd.s32 1, %s551_s10  ;;  %s38_s15 = sadd.s32 1, %s543_s8 }
   0x8   : > { %p31_p0 = scmp.ge.s32.totalorder %s29_s14, 2  ;;  %p45_p1 = scmp.ne.s32.totalorder %s543_s8, %s539_s7 }
   0x9   : > { %p46_p2 = scmp.eq.s32.totalorder %s555_s11, 0  ;;  %p51_p3 = scmp.ne.s32.totalorder %s539_s7, %s535_s6 }
   0xa   : > { %s816_s14 = smov (%p31_p0, %s29_s14), 0  ;;  %p52_p5 = scmp.eq.s32.totalorder %s348_s12, 0 }
   0xb   : > { %p614_p4 = por %p46_p2, %p45_p1  ;;  %s33_s17 = ssub.s32 %s551_s10, %s816_s14 }
   0xc   : > { %p77_p6 = scmp.eq.s32.totalorder %s348_s12, 1  ;;  %p36_p7 = scmp.eq.s32.totalorder %s33_s17, 0 }
   0xd   : > { %p620_p8 = por %p52_p5, %p51_p3  ;;  %p83_p10 = scmp.eq.s32.totalorder %s349_s13, 1 }
   0xe   : > { %p624_p9 = por %p77_p6, %p45_p1  ;;  %p377_p13 = scmp.lt.s32.totalorder %s555_s11, 2 }
   0xf   : > { %s629_s20 = scalar_select %p36_p7, %s543_s8, %s38_s15  }
  0x10   : > { %s803_s19 = scalar_select %p624_p9, 1, 0 }
  0x11   : > { %p631_p11 = por %p83_p10, %p51_p3  ;;  %s103_s22 = sand.u32 1, %s543_s8  }
  0x12   : > { %s352_s23 = sshll.u32 %s103_s22, 6  ;;  %s363_s24 = sshll.u32 %s551_s10, 10 }
  0x13   : > { %s804_s21 = scalar_select %p631_p11, 1, 0 }
  0x14   : > { %s642_s27 = scalar_lea.hbm %s798_s0, %s363_s24  ;;  %s107_s28 = scalar_lea.vmem [#allocation2], %s352_s23 }
  0x15   : > { %s116_s29 = sshll.u32 %s107_s28, 4  ;;  %p648_p0 = pnand %p377_p13, %p614_p4  ;;  %s644_s29 = int_to_ptr.vmem [resolvable:$true] %s116_s29 }
  0x16   : > { %s653_s2 = scalar_lea.sflag [#allocation3], %s103_s22  ;;  %s443_s3 = scalar_lea.hbm %s642_s27, 1024 }
  0x17   : > { %p444_p2 = scmp.ne.s32.totalorder %s642_s27, %s443_s3  ;;  %p445_p3 = pneg %p648_p0 }
  0x18   : > { %s448_s12 = scalar_lea.hbm %s798_s0, 2048  ;;  %p449_p4 = scmp.lt.u32.totalorder %s642_s27, %s798_s0 }
  0x19   : > { %p446_p5 = pnand %p445_p3, %p444_p2  ;;  %p450_p7 = scmp.lt.u32.totalorder %s448_s12, %s443_s3 }
  0x1a   : > { %p452_p13 = scmp.lt.u32.totalorder %s443_s3, %s642_s27 }
  0x1b   : > { %p447_p6 = pneg %p446_p5  ;;  %p451_p10 = por %p450_p7, %p449_p4 }
  0x1d   : > { %p453_p12 = por %p452_p13, %p451_p10 }
  0x1f   : > { %p454_p1 = pnand %p453_p12, %p447_p6 }
  0x21   : > { %457 = shalt.err (!%p454_p1)
}
  0x22   : > { %s458_s16 = scalar_lea.vmem %s644_s29, 1024  ;;  %s557_s17 = smov [#allocation2]  }
  0x23   : > { %p459_p2 = scmp.ne.s32.totalorder %s644_s29, %s458_s16  ;;  %s463_s22 = sshll.u32 %s557_s17, 4  ;;  %s464_s22 = int_to_ptr.vmem [resolvable:$false] %s463_s22 }
  0x24   : > { %s465_s23 = scalar_lea.vmem %s464_s22, 2048  ;;  %p466_p9 = scmp.lt.s32.totalorder %s644_s29, %s464_s22 }
  0x25   : > { %p461_p5 = pnand %p459_p2, %p445_p3  ;;  %p467_p4 = scmp.lt.s32.totalorder %s465_s23, %s458_s16 }
  0x27   : > { %p462_p11 = pneg %p461_p5  ;;  %p468_p7 = por %p467_p4, %p466_p9 }
  0x29   : > { %p469_p10 = pnand %p468_p7, %p462_p11 }
  0x2b   : > { %472 = shalt.err (!%p469_p10)
}
  0x2c   : > { %s558_s24 = smov 256   ;;  %s559_s25 = smov 16  }
  0x2d   : > { %372 = dma.hbm_to_vmem [thread:$0]  (!%p648_p0), %s642_s27, 1024, %s644_s29, %s653_s2, %s558_s24, %s558_s24, %s559_s25  }
  0x2e   : > { %p124_p12 = scmp.lt.s32.totalorder %s555_s11, 3  ;;  %p806_p1 = scmp.ge.s32.totalorder %s555_s11, 1 }
  0x30   : > { %p125_p3 = pnand %p806_p1, %p124_p12 }
  0x31   : > { %s685_s26 = sand.u32 (!%p125_p3), 1, %s539_s7  }
  0x32   : > { %128 = sbr.rel (%p125_p3) target bundleno = 149 (0x95), region = 24  ;;  %s356_s28 = sshll.u32 (!%p125_p3), %s685_s26, 6 }
  0x33   : > { %s131_s3 = scalar_lea.sflag (!%p125_p3), [#allocation3], %s685_s26  ;;  %s134_s4 = scalar_lea.vmem (!%p125_p3), [#allocation2], %s356_s28 }
  0x39   : > { %526 = dma.done.wait (%p620_p8), %s131_s3, 1024  }
  0x3a   : > { %528 = vsyncadd (%p620_p8), %s131_s3, 4294966272  ;;  %v163_v0 = vlaneseq  ;;  %v155_v4 = vld [vmem:[%s134_s4] sm:$0xff]  ;;  %v156_v5 = vld [vmem:[%s134_s4 + $0x8] sm:$0xff]  ;;  %s701_s27 = scalar_lea.vmem [#allocation5], %s356_s28  ;;  %s364_s29 = sshll.u32 %s547_s9, 10 }
  0x3b   : > { %v699_v6 = vld [vmem:[%s134_s4 + $0x10] sm:$0xff]  ;;  %237 = vst [vmem:[%s701_s27] sm:$0xff] %v155_v4  ;;  %238 = vst [vmem:[%s701_s27 + $0x8] sm:$0xff] %v156_v5  ;;  %v705_v7 = vld [vmem:[%s134_s4 + $0x20] sm:$0xff]  ;;  %s261_s18 = sshll.u32 %s701_s27, 4  ;;  %s739_s2 = scalar_lea.hbm %s799_s1, %s364_s29  ;;  %s728_s18 = int_to_ptr.vmem [resolvable:$true] %s261_s18 }
  0x3c   : > { %v164_v1 = vshrl.u32 %v163_v0, 7  ;;  %v711_v9 = vld [vmem:[%s134_s4 + $0x18] sm:$0xff]  ;;  %v713_v10 = vld [vmem:[%s134_s4 + $0x28] sm:$0xff]  ;;  %v161_v14 = vld [vmem:[%s134_s4 + $0x30] sm:$0xff]  ;;  %s246_s5 = scalar_lea.sflag [#allocation4], %s685_s26  ;;  %s473_s12 = scalar_lea.vmem %s728_s18, 1024 }
  0x3d   : > { %v162_v15 = vld [vmem:[%s134_s4 + $0x38] sm:$0xff]  ;;  %243 = vst [vmem:[%s701_s27 + $0x30] sm:$0xff] %v161_v14  ;;  %p474_p8 = scmp.ne.s32.totalorder %s728_s18, %s473_s12  ;;  %p807_p9 = scmp.ne.s32.totalorder %s803_s19, 0 }
  0x3e   : > { %v693_v2 = vadd.s32 8, %v164_v1  ;;  %244 = vst [vmem:[%s701_s27 + $0x38] sm:$0xff] %v162_v15  ;;  %s560_s13 = smov [#allocation5]  }
  0x3f   : > { %p475_p11 = pnand %p474_p8, %p807_p9  ;;  %s477_s15 = sshll.u32 %s560_s13, 4  ;;  %s478_s15 = int_to_ptr.vmem [resolvable:$false] %s477_s15 }
  0x40   : > { %v696_v3 = vadd.s32 8, %v693_v2  ;;  %vm167_vm0 = vcmp.ge.s32.totalorder %v693_v2, 9  ;;  %s479_s16 = scalar_lea.vmem %s478_s15, 2048  ;;  %p480_p6 = scmp.lt.s32.totalorder %s728_s18, %s478_s15 }
  0x41   : > { %v177_v8 = vsel %vm167_vm0, %v699_v6, -inf  ;;  %v178_v12 = vsel %vm167_vm0, %v711_v9, -inf  ;;  %p476_p0 = pneg %p475_p11  ;;  %p481_p13 = scmp.lt.s32.totalorder %s479_s16, %s473_s12 }
  0x42   : > { %vm170_vm1 = vcmp.lt.s32.totalorder %v696_v3, 21 }
  0x43   : > { %v179_v11 = vsel %vm170_vm1, %v705_v7, -inf  ;;  %v180_v13 = vsel %vm170_vm1, %v713_v10, -inf  ;;  %p482_p2 = por %p481_p13, %p480_p6 }
  0x44   : > { %v181_v16 = vmax.f32 %v177_v8, %v179_v11  ;;  %v188_v17 = vmax.f32 %v178_v12, %v180_v13 }
  0x45   : > { %p483_p5 = pnand %p482_p2, %p476_p0 }
  0x46   : > { %v182_v18 = vrot.slane %v181_v16, 4  ;;  %v189_v19 = vrot.slane %v188_v17, 4 }
  0x48   : > { %v183_v20 = vmax.f32 %v181_v16, %v182_v18  ;;  %v190_v21 = vmax.f32 %v188_v17, %v189_v19 }
  0x4a   : > { %v184_v22 = vrot.slane %v183_v20, 2  ;;  %v191_v23 = vrot.slane %v190_v21, 2 }
  0x4c   : > { %v185_v24 = vmax.f32 %v183_v20, %v184_v22  ;;  %v192_v25 = vmax.f32 %v190_v21, %v191_v23 }
  0x4e   : > { %v186_v26 = vrot.slane %v185_v24, 1  ;;  %v193_v27 = vrot.slane %v192_v25, 1 }
  0x50   : > { %v187_v28 = vmax.f32 %v185_v24, %v186_v26  ;;  %v194_v29 = vmax.f32 %v192_v25, %v193_v27 }
  0x52   : > { %v195_v30 = vsub.f32 %v177_v8, %v187_v28  ;;  %v197_v31 = vsub.f32 %v179_v11, %v187_v28  ;;  %v196_v32 = vsub.f32 %v178_v12, %v194_v29  ;;  %v198_v33 = vsub.f32 %v180_v13, %v194_v29 }
  0x54   : > { %v199_v34 = vmul.f32 1.442695, %v195_v30  ;;  %v203_v35 = vmul.f32 1.442695, %v197_v31  ;;  %v201_v36 = vmul.f32 1.442695, %v196_v32 }
  0x55   : > { %v205_v37 = vmul.f32 1.442695, %v198_v33 }
  0x56   : > { %431 = vpow2.f32 %v199_v34 }
  0x57   : > { %433 = vpow2.f32 %v203_v35 }
  0x58   : > { %435 = vpow2.f32 %v201_v36 }
  0x59   : > { %437 = vpow2.f32 %v205_v37 }
  0x60   : > { %v432_v38 = vpop.eup %431 }
  0x61   : > { %v434_v39 = vpop.eup %433 }
  0x62   : > { %v436_v40 = vpop.eup %435  ;;  %v207_v41 = vadd.f32 %v434_v39, %v432_v38 }
  0x63   : > { %v438_v42 = vpop.eup %437 }
  0x64   : > { %v208_v43 = vrot.slane %v207_v41, 4  ;;  %v214_v44 = vadd.f32 %v438_v42, %v436_v40 }
  0x66   : > { %v209_v45 = vadd.f32 %v208_v43, %v207_v41  ;;  %v215_v46 = vrot.slane %v214_v44, 4 }
  0x68   : > { %v210_v47 = vrot.slane %v209_v45, 2  ;;  %v216_v48 = vadd.f32 %v215_v46, %v214_v44 }
  0x6a   : > { %v211_v49 = vadd.f32 %v210_v47, %v209_v45  ;;  %v217_v50 = vrot.slane %v216_v48, 2 }
  0x6c   : > { %v212_v51 = vrot.slane %v211_v49, 1  ;;  %v218_v52 = vadd.f32 %v217_v50, %v216_v48 }
  0x6e   : > { %v213_v53 = vadd.f32 %v212_v51, %v211_v49  ;;  %v219_v54 = vrot.slane %v218_v52, 1 }
  0x70   : > { %439 = vrcp.f32 %v213_v53  ;;  %v220_v55 = vadd.f32 %v219_v54, %v218_v52 }
  0x72   : > { %441 = vrcp.f32 %v220_v55 }
  0x7a   : > { %v440_v56 = vpop.eup %439 }
  0x7b   : > { %v223_v57 = vmul.f32 %v440_v56, %v213_v53 }
  0x7c   : > { %v442_v58 = vpop.eup %441 }
  0x7d   : > { %v225_v59 = vsub.f32 2.0, %v223_v57  ;;  %v224_v60 = vmul.f32 %v442_v58, %v220_v55 }
  0x7f   : > { %v227_v61 = vmul.f32 %v440_v56, %v225_v59  ;;  %v226_v62 = vsub.f32 2.0, %v224_v60 }
  0x81   : > { %v229_v63 = vmul.f32 %v432_v38, %v227_v61  ;;  %v228_v0 = vmul.f32 %v442_v58, %v226_v62  ;;  %v231_v1 = vmul.f32 %v434_v39, %v227_v61 }
  0x83   : > { %v233_v4 = vsel %vm167_vm0, %v229_v63, %v699_v6  ;;  %v230_v5 = vmul.f32 %v436_v40, %v228_v0  ;;  %v235_v8 = vsel %vm170_vm1, %v231_v1, %v705_v7  ;;  %v232_v11 = vmul.f32 %v438_v42, %v228_v0 }
  0x84   : > { %239 = vst [vmem:[%s701_s27 + $0x10] sm:$0xff] %v233_v4  ;;  %241 = vst [vmem:[%s701_s27 + $0x20] sm:$0xff] %v235_v8 }
  0x85   : > { %v234_v12 = vsel %vm167_vm0, %v230_v5, %v711_v9  ;;  %v236_v6 = vsel %vm170_vm1, %v232_v11, %v713_v10 }
  0x86   : > { %240 = vst [vmem:[%s701_s27 + $0x18] sm:$0xff] %v234_v12  ;;  %242 = vst [vmem:[%s701_s27 + $0x28] sm:$0xff] %v236_v6 }
  0x87   : > { %486 = shalt.err (!%p483_p5)
}
  0x88   : > { %s487_s17 = scalar_lea.hbm %s739_s2, 1024  ;;  %s491_s24 = scalar_lea.hbm %s799_s1, 2048 }
  0x89   : > { %p488_p4 = scmp.ne.s32.totalorder %s739_s2, %s487_s17  ;;  %p492_p12 = scmp.lt.u32.totalorder %s739_s2, %s799_s1 }
  0x8a   : > { %p493_p1 = scmp.lt.u32.totalorder %s491_s24, %s487_s17  ;;  %p495_p8 = scmp.lt.u32.totalorder %s487_s17, %s739_s2 }
  0x8b   : > { %p489_p7 = pnand %p488_p4, %p807_p9 }
  0x8c   : > { %p494_p3 = por %p493_p1, %p492_p12 }
  0x8d   : > { %p490_p10 = pneg %p489_p7 }
  0x8e   : > { %p496_p11 = por %p495_p8, %p494_p3 }
  0x90   : > { %p497_p0 = pnand %p496_p11, %p490_p10 }
  0x92   : > { %500 = shalt.err (!%p497_p0)
}
  0x93   : > { %s561_s3 = smov 256   ;;  %s562_s4 = smov 16  }
  0x94   : > { %367 = dma.vmem_to_hbm [thread:$0]  (%p807_p9), %s728_s18, 1024, %s739_s2, %s246_s5, %s561_s3, %s561_s3, %s562_s4  }
  0x95 PF: > { %s276_s27 = sand.u32 1, %s535_s6   ;;  %p808_p6 = scmp.ne.s32.totalorder %s804_s21, 0 }
  0x96   : > { %p809_p13 = scmp.ge.s32.totalorder %s555_s11, 2  ;;  %s277_s29 = scalar_lea.sflag [#allocation4], %s276_s27 }
  0x98   : > { %p374_p2 = pnand %p809_p13, %p808_p6 }
  0x9a   : > { %530 = dma.done.wait (!%p374_p2), %s277_s29, 1024  }
  0x9b   : > { %532 = vsyncadd (!%p374_p2), %s277_s29, 4294966272  ;;  %s17_s11 = sadd.s32 1, %s555_s11   ;;  %s810_s6 = smov %s539_s7 }
  0x9c   : > { %p14_p5 = scmp.ge.s32.totalorder %s17_s11, 4   ;;  %s811_s7 = smov %s543_s8 }
  0x9d   : > { %s812_s8 = smov %s629_s20  ;;  %s813_s9 = smov %s551_s10 }
  0x9e   : > { %s814_s10 = smov %s816_s14  ;;  %16 = sbr.rel (!%p14_p5) target bundleno = 6 (0x6), region = 69 }
  0xa5   :  { %282 = vsyncpa [#allocation3], 1 }
  0xa6   :  { %284 = vsyncpa [#allocation3 + $0x1], 1 }
  0xa7   :  { %285 = vsyncpa [#allocation4], 1 }
  0xa8   :  { %287 = vsyncpa [#allocation4 + $0x1], 1 }

</bundles_post_ra>
